<compile_context>
chip_gen: v7x
topology: tpu7x:2x2x1
jax: 0.10.0
libtpu: 0.0.40
codegen_flags: <defaults>
</compile_context>

<pallas_src>
import functools

import jax
import jax.numpy as jnp
from jax.experimental import pallas as pl
from jax.experimental.pallas import tpu as pltpu


def _mine_kernel(z1_ref, z2_ref, z2p_ref,
                 w1a_ref, w1b_ref, b1_ref,
                 w2_ref, b2_ref,
                 w3_ref, b3_ref,
                 w4_ref, b4_ref,
                 out_ref,
                 sum_tj_ref, m_ref, s_ref,
                 *, batch, tile_b):
    i = pl.program_id(0)

    @pl.when(i == 0)
    def _init():
        sum_tj_ref[...] = jnp.zeros_like(sum_tj_ref)
        m_ref[...] = jnp.full_like(m_ref, -jnp.inf)
        s_ref[...] = jnp.zeros_like(s_ref)

    # ---- fused first layer: concat folded into split-W1, joint/marginal stacked ----
    z1b = z1_ref[...].astype(jnp.bfloat16)                                 # [TB, L]
    zz = jnp.concatenate([z2_ref[...], z2p_ref[...]], axis=0)              # [2TB, L]
    zzb = zz.astype(jnp.bfloat16)

    a = jnp.dot(z1b, w1a_ref[...], preferred_element_type=jnp.float32)     # [TB, H]
    bb = jnp.dot(zzb, w1b_ref[...], preferred_element_type=jnp.float32)    # [2TB, H]
    h = jnp.concatenate([a, a], axis=0) + bb + b1_ref[...]
    h = jnp.maximum(h, 0.0)

    h = jnp.dot(h.astype(jnp.bfloat16), w2_ref[...],
                preferred_element_type=jnp.float32) + b2_ref[...]
    h = jnp.maximum(h, 0.0)

    h = jnp.dot(h.astype(jnp.bfloat16), w3_ref[...],
                preferred_element_type=jnp.float32) + b3_ref[...]
    h = jnp.maximum(h, 0.0)                                                # [2TB, H//2]

    # ---- N=1 output layer on the VPU (mul + lane reduction), MXU left free ----
    t = jnp.sum(h * w4_ref[...], axis=-1, keepdims=True) + b4_ref[...]     # [2TB, 1]

    t_joint = t[:tile_b]
    t_marg = t[tile_b:]

    # Mask rows that are batch padding (only possible in the last tile).
    row = i * tile_b + jax.lax.broadcasted_iota(jnp.int32, (tile_b, 1), 0)
    valid = row < batch
    tj = jnp.where(valid, t_joint, 0.0)
    tm = jnp.where(valid, t_marg, -jnp.inf)

    # ---- streaming reductions: sum(t_joint) + online log-sum-exp over t_marginal ----
    sum_tj_ref[...] += jnp.sum(tj, axis=0, keepdims=True)
    m_prev = m_ref[...]
    m_new = jnp.maximum(m_prev, jnp.max(tm, axis=0, keepdims=True))
    s_ref[...] = (s_ref[...] * jnp.exp(m_prev - m_new)
                  + jnp.sum(jnp.exp(tm - m_new), axis=0, keepdims=True))
    m_ref[...] = m_new

    @pl.when(i == pl.num_programs(0) - 1)
    def _finalize():
        inv_n = jnp.float32(1.0 / batch)
        mean_tj = sum_tj_ref[...] * inv_n
        log_mean_exp = jnp.log(s_ref[...] * inv_n) + m_ref[...]
        out_ref[...] = mean_tj - log_mean_exp


@functools.partial(jax.jit, static_argnames=("tile_b",))
def mine_forward(z1, z2, perm, params, tile_b=512):
    """MINE forward: mi_lb = mean(T(joint)) - (log(mean(exp(T(marg) - max))) + max)."""
    w1, b1, w2, b2, w3, b3, w4, b4 = params
    B, L = z1.shape
    H = w1.shape[1]
    H2 = w3.shape[1]

    z1 = z1.astype(jnp.float32)
    z2 = z2.astype(jnp.float32)
    # TODO(synk): the random permutation + z2[perm] row gather stay in plain-JAX glue;
    # an in-kernel gather would require a per-row grid / scalar-prefetch Element spec.
    z2p = jnp.take(z2, perm, axis=0)

    # Split W1 so the [B, 2L] concatenations never materialize; cast matmul weights
    # to bf16 (f32 accumulation inside the kernel); present W4 as a [1, H2] row.
    w1a = w1[:L].astype(jnp.bfloat16)
    w1b = w1[L:].astype(jnp.bfloat16)
    w2b = w2.astype(jnp.bfloat16)
    w3b = w3.astype(jnp.bfloat16)
    w4t = w4.reshape(1, H2).astype(jnp.float32)

    tb = min(tile_b, B)
    num_tiles = pl.cdiv(B, tb)
    b_pad = num_tiles * tb
    if b_pad != B:
        pad = ((0, b_pad - B), (0, 0))
        z1 = jnp.pad(z1, pad)
        z2 = jnp.pad(z2, pad)
        z2p = jnp.pad(z2p, pad)

    kernel = functools.partial(_mine_kernel, batch=B, tile_b=tb)

    row_spec = pl.BlockSpec((tb, L), lambda i: (i, 0))

    def const(shape):
        return pl.BlockSpec(shape, lambda i: (0, 0))

    out = pl.pallas_call(
        kernel,
        grid=(num_tiles,),
        in_specs=[row_spec, row_spec, row_spec,
                  const((L, H)), const((L, H)), const((1, H)),
                  const((H, H)), const((1, H)),
                  const((H, H2)), const((1, H2)),
                  const((1, H2)), const((1, 1))],
        out_specs=pl.BlockSpec((1, 1), lambda i: (0, 0)),
        out_shape=jax.ShapeDtypeStruct((1, 1), jnp.float32),
        scratch_shapes=[pltpu.VMEM((1, 1), jnp.float32),   # running sum(t_joint)
                        pltpu.VMEM((1, 1), jnp.float32),   # running max(t_marg)
                        pltpu.VMEM((1, 1), jnp.float32)],  # running sum(exp(t_marg - max))
        compiler_params=pltpu.CompilerParams(
            dimension_semantics=("arbitrary",)),
    )(z1, z2, z2p, w1a, w1b, b1, w2b, b2, w3b, b3, w4t, b4)
    return out[0, 0]


def init_mine_params(key, latent_dim=16, hidden=256):
    """Mirrors nn.init.normal_(w, 0, 0.02), zero biases. Weights stored [in, out]."""
    dims = [(latent_dim * 2, hidden),
            (hidden, hidden),
            (hidden, hidden // 2),
            (hidden // 2, 1)]
    params = []
    keys = jax.random.split(key, len(dims))
    for k, (d_in, d_out) in zip(keys, dims):
        w = 0.02 * jax.random.normal(k, (d_in, d_out), dtype=jnp.float32)
        b = jnp.zeros((1, d_out), dtype=jnp.float32)
        params.extend([w, b])
    return tuple(params)


if __name__ == "__main__":
    batch = 8
    latent_dim = 16
    hidden = 256   # module default; keeps hidden / hidden//2 lane-aligned (256 / 128)

    key = jax.random.PRNGKey(0)
    k_z1, k_z2, k_perm, k_params = jax.random.split(key, 4)

    z1 = jax.random.normal(k_z1, (batch, latent_dim), dtype=jnp.float32)
    z2 = jax.random.normal(k_z2, (batch, latent_dim), dtype=jnp.float32)
    # torch.randperm(batch) equivalent — deterministic permutation, done in glue.
    perm = jax.random.permutation(k_perm, batch)

    params = init_mine_params(k_params, latent_dim=latent_dim, hidden=hidden)

    mi_lb = mine_forward(z1, z2, perm, params)
    jax.block_until_ready(mi_lb)

    # Mixed-precision reference mirroring the kernel math exactly (bf16 operands,
    # f32 accumulation, VPU-style final layer).
    def ref_mixed(z1, z2, perm, params):
        w1, b1, w2, b2, w3, b3, w4, b4 = params
        L = z1.shape[1]
        B = z1.shape[0]
        w1a = w1[:L].astype(jnp.bfloat16)
        w1b = w1[L:].astype(jnp.bfloat16)
        w2b = w2.astype(jnp.bfloat16)
        w3b = w3.astype(jnp.bfloat16)
        w4t = w4.reshape(1, -1)
        z2p = z2[perm]
        a = jnp.dot(z1.astype(jnp.bfloat16), w1a, preferred_element_type=jnp.float32)
        zz = jnp.concatenate([z2, z2p], axis=0).astype(jnp.bfloat16)
        bb = jnp.dot(zz, w1b, preferred_element_type=jnp.float32)
        h = jnp.maximum(jnp.concatenate([a, a], axis=0) + bb + b1, 0.0)
        h = jnp.maximum(jnp.dot(h.astype(jnp.bfloat16), w2b,
                                preferred_element_type=jnp.float32) + b2, 0.0)
        h = jnp.maximum(jnp.dot(h.astype(jnp.bfloat16), w3b,
                                preferred_element_type=jnp.float32) + b3, 0.0)
        t = jnp.sum(h * w4t, axis=-1, keepdims=True) + b4
        tj, tm = t[:B], t[B:]
        mx = jnp.max(tm)
        return jnp.mean(tj) - (jnp.log(jnp.mean(jnp.exp(tm - mx))) + mx)

    # Full-f32 reference of the original PyTorch semantics.
    def ref_f32(z1, z2, perm, params):
        w1, b1, w2, b2, w3, b3, w4, b4 = params
        def mlp(x):
            h = jnp.maximum(x @ w1 + b1, 0.0)
            h = jnp.maximum(h @ w2 + b2, 0.0)
            h = jnp.maximum(h @ w3 + b3, 0.0)
            return h @ w4 + b4
        tj = mlp(jnp.concatenate([z1, z2], -1))
        tm = mlp(jnp.concatenate([z1, z2[perm]], -1))
        mx = jnp.max(tm)
        return jnp.mean(tj) - (jnp.log(jnp.mean(jnp.exp(tm - mx))) + mx)

    rm = float(ref_mixed(z1, z2, perm, params))
    rf = float(ref_f32(z1, z2, perm, params))
    mi = float(mi_lb)

    assert jnp.isfinite(mi_lb), mi
    assert abs(mi - rm) < 1e-5, ("mixed-precision mismatch", mi, rm)
    assert abs(mi - rf) < 5e-4, ("f32-reference mismatch", mi, rf)

    print("KERNEL_OK")
</pallas_src>

<mosaic_0001>
module attributes {stable_mosaic.version = 11 : i64} {
  func.func @_mine_kernel(%arg0: i32, %arg1: memref<8x16xf32, #tpu.memory_space<vmem>>, %arg2: memref<8x16xf32, #tpu.memory_space<vmem>>, %arg3: memref<8x16xf32, #tpu.memory_space<vmem>>, %arg4: memref<16x256xbf16, #tpu.memory_space<vmem>>, %arg5: memref<16x256xbf16, #tpu.memory_space<vmem>>, %arg6: memref<1x256xf32, #tpu.memory_space<vmem>>, %arg7: memref<256x256xbf16, #tpu.memory_space<vmem>>, %arg8: memref<1x256xf32, #tpu.memory_space<vmem>>, %arg9: memref<256x128xbf16, #tpu.memory_space<vmem>>, %arg10: memref<1x128xf32, #tpu.memory_space<vmem>>, %arg11: memref<1x128xf32, #tpu.memory_space<vmem>>, %arg12: memref<1x1xf32, #tpu.memory_space<vmem>>, %arg13: memref<1x1xf32, #tpu.memory_space<vmem>>, %arg14: memref<1x1xf32, #tpu.memory_space<vmem>>, %arg15: memref<1x1xf32, #tpu.memory_space<vmem>>, %arg16: memref<1x1xf32, #tpu.memory_space<vmem>>) attributes {dimension_semantics = [#tpu.dimension_semantics<arbitrary>], iteration_bounds = array<i64: 1>, scalar_prefetch = 0 : i64, scratch_operands = 3 : i64, tpu.core_type = #tpu.core_type<tc>, window_params = [{transform_indices = @transform_0, window_bounds = array<i64: 8, 16>}, {transform_indices = @transform_1, window_bounds = array<i64: 8, 16>}, {transform_indices = @transform_2, window_bounds = array<i64: 8, 16>}, {pipeline_mode = #tpu.pipeline_mode<synchronous>, transform_indices = @transform_3, window_bounds = array<i64: 16, 256>}, {pipeline_mode = #tpu.pipeline_mode<synchronous>, transform_indices = @transform_4, window_bounds = array<i64: 16, 256>}, {pipeline_mode = #tpu.pipeline_mode<synchronous>, transform_indices = @transform_5, window_bounds = array<i64: 1, 256>}, {pipeline_mode = #tpu.pipeline_mode<synchronous>, transform_indices = @transform_6, window_bounds = array<i64: 256, 256>}, {pipeline_mode = #tpu.pipeline_mode<synchronous>, transform_indices = @transform_7, window_bounds = array<i64: 1, 256>}, {pipeline_mode = #tpu.pipeline_mode<synchronous>, transform_indices = @transform_8, window_bounds = array<i64: 256, 128>}, {pipeline_mode = #tpu.pipeline_mode<synchronous>, transform_indices = @transform_9, window_bounds = array<i64: 1, 128>}, {pipeline_mode = #tpu.pipeline_mode<synchronous>, transform_indices = @transform_10, window_bounds = array<i64: 1, 128>}, {pipeline_mode = #tpu.pipeline_mode<synchronous>, transform_indices = @transform_11, window_bounds = array<i64: 1, 1>}, {pipeline_mode = #tpu.pipeline_mode<synchronous>, transform_indices = @transform_12, window_bounds = array<i64: 1, 1>}]} {
    %c0_i32 = arith.constant 0 : i32
    %0 = arith.cmpi eq, %arg0, %c0_i32 : i32
    %1 = arith.extui %0 : i1 to i32
    %c0_i32_0 = arith.constant 0 : i32
    %2 = arith.cmpi ne, %1, %c0_i32_0 : i32
    scf.if %2 {
      %cst_51 = arith.constant 0.000000e+00 : f32
      %80 = vector.broadcast %cst_51 : f32 to vector<1x1xf32>
      %c0_52 = arith.constant 0 : index
      %c0_53 = arith.constant 0 : index
      %81 = vector.load %arg14[%c0_52, %c0_53] : memref<1x1xf32, #tpu.memory_space<vmem>>, vector<1x1xf32>
      tpu.vector_store %arg14[%c0_52, %c0_53], %80 {strides = array<i32>} : memref<1x1xf32, #tpu.memory_space<vmem>>, vector<1x1xf32>,
      %cst_54 = arith.constant 0xFF800000 : f32
      %82 = vector.broadcast %cst_54 : f32 to vector<1x1xf32>
      %c0_55 = arith.constant 0 : index
      %c0_56 = arith.constant 0 : index
      %83 = vector.load %arg15[%c0_55, %c0_56] : memref<1x1xf32, #tpu.memory_space<vmem>>, vector<1x1xf32>
      tpu.vector_store %arg15[%c0_55, %c0_56], %82 {strides = array<i32>} : memref<1x1xf32, #tpu.memory_space<vmem>>, vector<1x1xf32>,
      %cst_57 = arith.constant 0.000000e+00 : f32
      %84 = vector.broadcast %cst_57 : f32 to vector<1x1xf32>
      %c0_58 = arith.constant 0 : index
      %c0_59 = arith.constant 0 : index
      %85 = vector.load %arg16[%c0_58, %c0_59] : memref<1x1xf32, #tpu.memory_space<vmem>>, vector<1x1xf32>
      tpu.vector_store %arg16[%c0_58, %c0_59], %84 {strides = array<i32>} : memref<1x1xf32, #tpu.memory_space<vmem>>, vector<1x1xf32>,
    } else {
    }
    %c0 = arith.constant 0 : index
    %c0_1 = arith.constant 0 : index
    %3 = vector.load %arg1[%c0, %c0_1] : memref<8x16xf32, #tpu.memory_space<vmem>>, vector<8x16xf32>
    %4 = arith.truncf %3 : vector<8x16xf32> to vector<8x16xbf16>
    %c0_2 = arith.constant 0 : index
    %c0_3 = arith.constant 0 : index
    %5 = vector.load %arg2[%c0_2, %c0_3] : memref<8x16xf32, #tpu.memory_space<vmem>>, vector<8x16xf32>
    %c0_4 = arith.constant 0 : index
    %c0_5 = arith.constant 0 : index
    %6 = vector.load %arg3[%c0_4, %c0_5] : memref<8x16xf32, #tpu.memory_space<vmem>>, vector<8x16xf32>
    %7 = tpu.concatenate %5, %6 in 0 : vector<8x16xf32>, vector<8x16xf32> -> vector<16x16xf32>
    %8 = arith.truncf %7 : vector<16x16xf32> to vector<16x16xbf16>
    %c0_6 = arith.constant 0 : index
    %c0_7 = arith.constant 0 : index
    %9 = vector.load %arg4[%c0_6, %c0_7] : memref<16x256xbf16, #tpu.memory_space<vmem>>, vector<16x256xbf16>
    %cst = arith.constant dense<0.000000e+00> : vector<8x256xf32>
    %10 = tpu.matmul %4, %9, %cst {dimension_numbers = #tpu.dot_dimension_numbers<[1], [0], [0], [1], [0, 0, 1, 1], [], []>} : vector<8x16xbf16>, vector<16x256xbf16>, vector<8x256xf32> -> vector<8x256xf32>
    %c0_8 = arith.constant 0 : index
    %c0_9 = arith.constant 0 : index
    %11 = vector.load %arg5[%c0_8, %c0_9] : memref<16x256xbf16, #tpu.memory_space<vmem>>, vector<16x256xbf16>
    %cst_10 = arith.constant dense<0.000000e+00> : vector<16x256xf32>
    %12 = tpu.matmul %8, %11, %cst_10 {dimension_numbers = #tpu.dot_dimension_numbers<[1], [0], [0], [1], [0, 0, 1, 1], [], []>} : vector<16x16xbf16>, vector<16x256xbf16>, vector<16x256xf32> -> vector<16x256xf32>
    %13 = tpu.concatenate %10, %10 in 0 : vector<8x256xf32>, vector<8x256xf32> -> vector<16x256xf32>
    %14 = arith.addf %13, %12 : vector<16x256xf32>
    %c0_11 = arith.constant 0 : index
    %c0_12 = arith.constant 0 : index
    %15 = vector.load %arg6[%c0_11, %c0_12] : memref<1x256xf32, #tpu.memory_space<vmem>>, vector<1x256xf32>
    %16 = vector.broadcast %15 : vector<1x256xf32> to vector<16x256xf32>
    %17 = arith.addf %14, %16 : vector<16x256xf32>
    %cst_13 = arith.constant 0.000000e+00 : f32
    %18 = vector.broadcast %cst_13 : f32 to vector<16x256xf32>
    %19 = arith.maximumf %17, %18 : vector<16x256xf32>
    %20 = arith.truncf %19 : vector<16x256xf32> to vector<16x256xbf16>
    %c0_14 = arith.constant 0 : index
    %c0_15 = arith.constant 0 : index
    %21 = vector.load %arg7[%c0_14, %c0_15] : memref<256x256xbf16, #tpu.memory_space<vmem>>, vector<256x256xbf16>
    %cst_16 = arith.constant dense<0.000000e+00> : vector<16x256xf32>
    %22 = tpu.matmul %20, %21, %cst_16 {dimension_numbers = #tpu.dot_dimension_numbers<[1], [0], [0], [1], [0, 0, 1, 1], [], []>} : vector<16x256xbf16>, vector<256x256xbf16>, vector<16x256xf32> -> vector<16x256xf32>
    %c0_17 = arith.constant 0 : index
    %c0_18 = arith.constant 0 : index
    %23 = vector.load %arg8[%c0_17, %c0_18] : memref<1x256xf32, #tpu.memory_space<vmem>>, vector<1x256xf32>
    %24 = vector.broadcast %23 : vector<1x256xf32> to vector<16x256xf32>
    %25 = arith.addf %22, %24 : vector<16x256xf32>
    %cst_19 = arith.constant 0.000000e+00 : f32
    %26 = vector.broadcast %cst_19 : f32 to vector<16x256xf32>
    %27 = arith.maximumf %25, %26 : vector<16x256xf32>
    %28 = arith.truncf %27 : vector<16x256xf32> to vector<16x256xbf16>
    %c0_20 = arith.constant 0 : index
    %c0_21 = arith.constant 0 : index
    %29 = vector.load %arg9[%c0_20, %c0_21] : memref<256x128xbf16, #tpu.memory_space<vmem>>, vector<256x128xbf16>
    %cst_22 = arith.constant dense<0.000000e+00> : vector<16x128xf32>
    %30 = tpu.matmul %28, %29, %cst_22 {dimension_numbers = #tpu.dot_dimension_numbers<[1], [0], [0], [1], [0, 0, 1, 1], [], []>} : vector<16x256xbf16>, vector<256x128xbf16>, vector<16x128xf32> -> vector<16x128xf32>
    %c0_23 = arith.constant 0 : index
    %c0_24 = arith.constant 0 : index
    %31 = vector.load %arg10[%c0_23, %c0_24] : memref<1x128xf32, #tpu.memory_space<vmem>>, vector<1x128xf32>
    %32 = vector.broadcast %31 : vector<1x128xf32> to vector<16x128xf32>
    %33 = arith.addf %30, %32 : vector<16x128xf32>
    %cst_25 = arith.constant 0.000000e+00 : f32
    %34 = vector.broadcast %cst_25 : f32 to vector<16x128xf32>
    %35 = arith.maximumf %33, %34 : vector<16x128xf32>
    %c0_26 = arith.constant 0 : index
    %c0_27 = arith.constant 0 : index
    %36 = vector.load %arg11[%c0_26, %c0_27] : memref<1x128xf32, #tpu.memory_space<vmem>>, vector<1x128xf32>
    %37 = vector.broadcast %36 : vector<1x128xf32> to vector<16x128xf32>
    %38 = arith.mulf %35, %37 : vector<16x128xf32>
    %cst_28 = arith.constant dense<0.000000e+00> : vector<16xf32>
    %39 = vector.multi_reduction <add>, %38, %cst_28 [1] : vector<16x128xf32> to vector<16xf32>
    %40 = vector.shape_cast %39 : vector<16xf32> to vector<16x1xf32>
    %c0_29 = arith.constant 0 : index
    %c0_30 = arith.constant 0 : index
    %41 = vector.load %arg12[%c0_29, %c0_30] : memref<1x1xf32, #tpu.memory_space<vmem>>, vector<1x1xf32>
    %42 = vector.broadcast %41 : vector<1x1xf32> to vector<16x1xf32>
    %43 = arith.addf %40, %42 : vector<16x1xf32>
    %44 = vector.extract_strided_slice %43 {offsets = [0, 0], sizes = [8, 1], strides = [1, 1]} : vector<16x1xf32> to vector<8x1xf32>
    %45 = vector.extract_strided_slice %43 {offsets = [8, 0], sizes = [8, 1], strides = [1, 1]} : vector<16x1xf32> to vector<8x1xf32>
    %c8_i32 = arith.constant 8 : i32
    %46 = arith.muli %arg0, %c8_i32 : i32
    %47 = tpu.iota {dimensions = array<i32: 0>} : vector<8x1xi32>
    %48 = vector.broadcast %46 : i32 to vector<8x1xi32>
    %49 = arith.addi %48, %47 : vector<8x1xi32>
    %c8_i32_31 = arith.constant 8 : i32
    %50 = vector.broadcast %c8_i32_31 : i32 to vector<8x1xi32>
    %51 = arith.cmpi slt, %49, %50 : vector<8x1xi32>
    %cst_32 = arith.constant 0.000000e+00 : f32
    %52 = vector.broadcast %cst_32 : f32 to vector<8x1xf32>
    %53 = arith.select %51, %44, %52 : vector<8x1xi1>, vector<8x1xf32>
    %cst_33 = arith.constant 0xFF800000 : f32
    %54 = vector.broadcast %cst_33 : f32 to vector<8x1xf32>
    %55 = arith.select %51, %45, %54 : vector<8x1xi1>, vector<8x1xf32>
    %c0_34 = arith.constant 0 : index
    %c0_35 = arith.constant 0 : index
    %56 = vector.load %arg14[%c0_34, %c0_35] : memref<1x1xf32, #tpu.memory_space<vmem>>, vector<1x1xf32>
    %cst_36 = arith.constant dense<0.000000e+00> : vector<1xf32>
    %57 = vector.multi_reduction <add>, %53, %cst_36 [0] : vector<8x1xf32> to vector<1xf32>
    %58 = vector.shape_cast %57 : vector<1xf32> to vector<1x1xf32>
    %59 = arith.addf %56, %58 : vector<1x1xf32>
    %c0_37 = arith.constant 0 : index
    %c0_38 = arith.constant 0 : index
    %60 = vector.load %arg14[%c0_37, %c0_38] : memref<1x1xf32, #tpu.memory_space<vmem>>, vector<1x1xf32>
    tpu.vector_store %arg14[%c0_37, %c0_38], %59 {strides = array<i32>} : memref<1x1xf32, #tpu.memory_space<vmem>>, vector<1x1xf32>,
    %c0_39 = arith.constant 0 : index
    %c0_40 = arith.constant 0 : index
    %61 = vector.load %arg15[%c0_39, %c0_40] : memref<1x1xf32, #tpu.memory_space<vmem>>, vector<1x1xf32>
    %cst_41 = arith.constant dense<0xFF800000> : vector<1xf32>
    %62 = vector.multi_reduction <maximumf>, %55, %cst_41 [0] : vector<8x1xf32> to vector<1xf32>
    %63 = vector.shape_cast %62 : vector<1xf32> to vector<1x1xf32>
    %64 = arith.maximumf %61, %63 : vector<1x1xf32>
    %c0_42 = arith.constant 0 : index
    %c0_43 = arith.constant 0 : index
    %65 = vector.load %arg16[%c0_42, %c0_43] : memref<1x1xf32, #tpu.memory_space<vmem>>, vector<1x1xf32>
    %66 = arith.subf %61, %64 : vector<1x1xf32>
    %67 = math.exp %66 : vector<1x1xf32>
    %68 = arith.mulf %65, %67 : vector<1x1xf32>
    %69 = vector.broadcast %64 : vector<1x1xf32> to vector<8x1xf32>
    %70 = arith.subf %55, %69 : vector<8x1xf32>
    %71 = math.exp %70 : vector<8x1xf32>
    %cst_44 = arith.constant dense<0.000000e+00> : vector<1xf32>
    %72 = vector.multi_reduction <add>, %71, %cst_44 [0] : vector<8x1xf32> to vector<1xf32>
    %73 = vector.shape_cast %72 : vector<1xf32> to vector<1x1xf32>
    %74 = arith.addf %68, %73 : vector<1x1xf32>
    %c0_45 = arith.constant 0 : index
    %c0_46 = arith.constant 0 : index
    %75 = vector.load %arg16[%c0_45, %c0_46] : memref<1x1xf32, #tpu.memory_space<vmem>>, vector<1x1xf32>
    tpu.vector_store %arg16[%c0_45, %c0_46], %74 {strides = array<i32>} : memref<1x1xf32, #tpu.memory_space<vmem>>, vector<1x1xf32>,
    %c0_47 = arith.constant 0 : index
    %c0_48 = arith.constant 0 : index
    %76 = vector.load %arg15[%c0_47, %c0_48] : memref<1x1xf32, #tpu.memory_space<vmem>>, vector<1x1xf32>
    tpu.vector_store %arg15[%c0_47, %c0_48], %64 {strides = array<i32>} : memref<1x1xf32, #tpu.memory_space<vmem>>, vector<1x1xf32>,
    %c0_i32_49 = arith.constant 0 : i32
    %77 = arith.cmpi eq, %arg0, %c0_i32_49 : i32
    %78 = arith.extui %77 : i1 to i32
    %c0_i32_50 = arith.constant 0 : i32
    %79 = arith.cmpi ne, %78, %c0_i32_50 : i32
    scf.if %79 {
      %c0_51 = arith.constant 0 : index
      %c0_52 = arith.constant 0 : index
      %80 = vector.load %arg14[%c0_51, %c0_52] : memref<1x1xf32, #tpu.memory_space<vmem>>, vector<1x1xf32>
      %cst_53 = arith.constant 1.250000e-01 : f32
      %81 = vector.broadcast %cst_53 : f32 to vector<1x1xf32>
      %82 = arith.mulf %80, %81 : vector<1x1xf32>
      %c0_54 = arith.constant 0 : index
      %c0_55 = arith.constant 0 : index
      %83 = vector.load %arg16[%c0_54, %c0_55] : memref<1x1xf32, #tpu.memory_space<vmem>>, vector<1x1xf32>
      %cst_56 = arith.constant 1.250000e-01 : f32
      %84 = vector.broadcast %cst_56 : f32 to vector<1x1xf32>
      %85 = arith.mulf %83, %84 : vector<1x1xf32>
      %86 = math.log %85 : vector<1x1xf32>
      %c0_57 = arith.constant 0 : index
      %c0_58 = arith.constant 0 : index
      %87 = vector.load %arg15[%c0_57, %c0_58] : memref<1x1xf32, #tpu.memory_space<vmem>>, vector<1x1xf32>
      %88 = arith.addf %86, %87 : vector<1x1xf32>
      %89 = arith.subf %82, %88 : vector<1x1xf32>
      %c0_59 = arith.constant 0 : index
      %c0_60 = arith.constant 0 : index
      %90 = vector.load %arg13[%c0_59, %c0_60] : memref<1x1xf32, #tpu.memory_space<vmem>>, vector<1x1xf32>
      tpu.vector_store %arg13[%c0_59, %c0_60], %89 {strides = array<i32>} : memref<1x1xf32, #tpu.memory_space<vmem>>, vector<1x1xf32>,
    } else {
    }
    return
  }
  func.func @transform_0(%arg0: i32) -> (i32, i32) {
    %c0_i32 = arith.constant 0 : i32
    %c0_i32_0 = arith.constant 0 : i32
    return %arg0, %c0_i32 : i32, i32
  }
  func.func @transform_1(%arg0: i32) -> (i32, i32) {
    %c0_i32 = arith.constant 0 : i32
    %c0_i32_0 = arith.constant 0 : i32
    return %arg0, %c0_i32 : i32, i32
  }
  func.func @transform_2(%arg0: i32) -> (i32, i32) {
    %c0_i32 = arith.constant 0 : i32
    %c0_i32_0 = arith.constant 0 : i32
    return %arg0, %c0_i32 : i32, i32
  }
  func.func @transform_3(%arg0: i32) -> (i32, i32) {
    %c0_i32 = arith.constant 0 : i32
    %c0_i32_0 = arith.constant 0 : i32
    %c0_i32_1 = arith.constant 0 : i32
    return %c0_i32, %c0_i32_0 : i32, i32
  }
  func.func @transform_4(%arg0: i32) -> (i32, i32) {
    %c0_i32 = arith.constant 0 : i32
    %c0_i32_0 = arith.constant 0 : i32
    %c0_i32_1 = arith.constant 0 : i32
    return %c0_i32, %c0_i32_0 : i32, i32
  }
  func.func @transform_5(%arg0: i32) -> (i32, i32) {
    %c0_i32 = arith.constant 0 : i32
    %c0_i32_0 = arith.constant 0 : i32
    %c0_i32_1 = arith.constant 0 : i32
    return %c0_i32, %c0_i32_0 : i32, i32
  }
  func.func @transform_6(%arg0: i32) -> (i32, i32) {
    %c0_i32 = arith.constant 0 : i32
    %c0_i32_0 = arith.constant 0 : i32
    %c0_i32_1 = arith.constant 0 : i32
    return %c0_i32, %c0_i32_0 : i32, i32
  }
  func.func @transform_7(%arg0: i32) -> (i32, i32) {
    %c0_i32 = arith.constant 0 : i32
    %c0_i32_0 = arith.constant 0 : i32
    %c0_i32_1 = arith.constant 0 : i32
    return %c0_i32, %c0_i32_0 : i32, i32
  }
  func.func @transform_8(%arg0: i32) -> (i32, i32) {
    %c0_i32 = arith.constant 0 : i32
    %c0_i32_0 = arith.constant 0 : i32
    %c0_i32_1 = arith.constant 0 : i32
    return %c0_i32, %c0_i32_0 : i32, i32
  }
  func.func @transform_9(%arg0: i32) -> (i32, i32) {
    %c0_i32 = arith.constant 0 : i32
    %c0_i32_0 = arith.constant 0 : i32
    %c0_i32_1 = arith.constant 0 : i32
    return %c0_i32, %c0_i32_0 : i32, i32
  }
  func.func @transform_10(%arg0: i32) -> (i32, i32) {
    %c0_i32 = arith.constant 0 : i32
    %c0_i32_0 = arith.constant 0 : i32
    %c0_i32_1 = arith.constant 0 : i32
    return %c0_i32, %c0_i32_0 : i32, i32
  }
  func.func @transform_11(%arg0: i32) -> (i32, i32) {
    %c0_i32 = arith.constant 0 : i32
    %c0_i32_0 = arith.constant 0 : i32
    %c0_i32_1 = arith.constant 0 : i32
    return %c0_i32, %c0_i32_0 : i32, i32
  }
  func.func @transform_12(%arg0: i32) -> (i32, i32) {
    %c0_i32 = arith.constant 0 : i32
    %c0_i32_0 = arith.constant 0 : i32
    %c0_i32_1 = arith.constant 0 : i32
    return %c0_i32, %c0_i32_0 : i32, i32
  }
}

</mosaic_0001>

<bundles_post_ra>
// kernel: mine_forward.1
= control target key start
LH: loop header
LB: loop body
LE: loop exit
PB: predicated region body
PF: predicated region fallthrough
CT: control target
= control target key end

     0   :  { %s1193_s0 = inlined_call_operand.vmem [shape: f32[8,16], index: 0, kind: input, shape index: {}]   ;;  %s1194_s1 = inlined_call_operand.vmem [shape: f32[8,16], index: 1, kind: input, shape index: {}]   ;;  %s1195_s2 = inlined_call_operand.vmem [shape: f32[8,16], index: 2, kind: input, shape index: {}]   ;;  %s1196_s3 = inlined_call_operand.vmem [shape: bf16[16,256], index: 3, kind: input, shape index: {}]   ;;  %s1197_s4 = inlined_call_operand.vmem [shape: bf16[16,256], index: 4, kind: input, shape index: {}]   ;;  %s1198_s5 = inlined_call_operand.vmem [shape: f32[1,256], index: 5, kind: input, shape index: {}]   ;;  %s1199_s6 = inlined_call_operand.vmem [shape: bf16[256,256], index: 6, kind: input, shape index: {}]   ;;  %s1200_s7 = inlined_call_operand.vmem [shape: f32[1,256], index: 7, kind: input, shape index: {}]   ;;  %s1201_s8 = inlined_call_operand.vmem [shape: bf16[256,128], index: 8, kind: input, shape index: {}]   ;;  %s1202_s9 = inlined_call_operand.vmem [shape: f32[1,128], index: 9, kind: input, shape index: {}]   ;;  %s1203_s10 = inlined_call_operand.vmem [shape: f32[1,128], index: 10, kind: input, shape index: {}]   ;;  %s1204_s11 = inlined_call_operand.<no memory space> [shape: f32[1,1], index: 11, kind: input, shape index: {}]   ;;  %s1205_s12 = inlined_call_operand.hbm [shape: f32[1,1], index: 12, kind: output, shape index: {}]  }
   0x1   :  { %v17_v0 = vstv %s1204_s11 }
   0x2   :  { %18 = vst [vmem:[#allocation5] sm:$0x1] %v17_v0 }
   0x3   :  { %v815_v1 = vld [vmem:[%s1196_s3 + $0x4] ss:$8 sps:$4 sm:$0xff]   ;;  %v817_v2 = vld [vmem:[%s1196_s3] ss:$8 sps:$4 sm:$0xff]   ;;  %v915_v3 = vmov 0   ;;  %vm70_vm0 = vcmask 130048  }
   0x4   :  { %106 = vmatprep.mubr.bf16.mxu1 %v915_v3  ;;  %v53_v4 = vld [vmem:[%s1193_s0] sm:$0xff]  ;;  %74 = vmatprep.subr.bf16.mxu1 %v815_v1  ;;  %v824_v10 = vld [vmem:[%s1199_s6 + $0x14] ss:$8 sps:$4 sm:$0xff]   ;;  %v826_v13 = vld [vmem:[%s1199_s6 + $0x10] ss:$8 sps:$4 sm:$0xff]  }
   0x5   :  { %v54_v5 = vpack.c.bf16 %v53_v4, %v53_v4  ;;  %v820_v6 = vld [vmem:[%s1197_s4 + $0x4] ss:$8 sps:$4 sm:$0xff]   ;;  %75 = vmatpush1.bf16.msra.mxu1 %v817_v2  ;;  %v818_v7 = vld [vmem:[%s1197_s4] ss:$8 sps:$4 sm:$0xff]   ;;  %v830_v17 = vld [vmem:[%s1199_s6 + $0x34] ss:$8 sps:$4 sm:$0xff]  }
   0x6   :  { %130 = vmatprep.subr.bf16.mxu1 %v820_v6  ;;  %v821_v8 = vld [vmem:[%s1199_s6 + $0x4] ss:$8 sps:$4 sm:$0xff]   ;;  %v823_v9 = vld [vmem:[%s1199_s6] ss:$8 sps:$4 sm:$0xff]   ;;  %v832_v18 = vld [vmem:[%s1199_s6 + $0x30] ss:$8 sps:$4 sm:$0xff]  }
   0x7   :  { %403 = vmatprep.subr.bf16.mxu0 %v821_v8  ;;  %v55_v11 = vld [vmem:[%s1194_s1] sm:$0xff]  ;;  %v836_v21 = vld [vmem:[%s1199_s6 + $0x54] ss:$8 sps:$4 sm:$0xff]   ;;  %v838_v22 = vld [vmem:[%s1199_s6 + $0x50] ss:$8 sps:$4 sm:$0xff]  }
   0x8   :  { %734 = vmatmul.mubr.msk.bf16.vlgmr.msra.gmra.mrb[0].mxu1 %vm70_vm0, %v54_v5  ;;  %v56_v12 = vld [vmem:[%s1195_s2] sm:$0xff]  ;;  %404 = vmatpush1.bf16.msra.mxu0 %v823_v9  ;;  %v842_v25 = vld [vmem:[%s1199_s6 + $0x74] ss:$8 sps:$4 sm:$0xff]   ;;  %v844_v26 = vld [vmem:[%s1199_s6 + $0x70] ss:$8 sps:$4 sm:$0xff]  }
   0x9   :  { %131 = vmatpush1.bf16.msra.mxu1 %v818_v7  ;;  %162 = vmatprep.mubr.bf16.mxu1 %v915_v3  ;;  %v827_v14 = vld [vmem:[%s1199_s6 + $0x24] ss:$8 sps:$4 sm:$0xff]   ;;  %v57_v15 = vpack.c.bf16 %v56_v12, %v55_v11  ;;  %v829_v16 = vld [vmem:[%s1199_s6 + $0x20] ss:$8 sps:$4 sm:$0xff]  }
   0xa   :  { %405 = vmatprep.subr.bf16.mxu0 %v824_v10  ;;  %v833_v19 = vld [vmem:[%s1199_s6 + $0x44] ss:$8 sps:$4 sm:$0xff]   ;;  %v835_v20 = vld [vmem:[%s1199_s6 + $0x40] ss:$8 sps:$4 sm:$0xff]  }
   0xb   :  { %v839_v23 = vld [vmem:[%s1199_s6 + $0x64] ss:$8 sps:$4 sm:$0xff]   ;;  %v841_v24 = vld [vmem:[%s1199_s6 + $0x60] ss:$8 sps:$4 sm:$0xff]  }
   0xc   :  { %406 = vmatpush1.bf16.msra.mxu0 %v826_v13 }
   0xd   :  { %407 = vmatprep.subr.bf16.mxu0 %v827_v14 }
  0x10   :  { %737 = vmatmul.mubr.msk.bf16.vlgmr.msra.gmra.mrb[4].mxu1 %vm70_vm0, %v57_v15  ;;  %408 = vmatpush1.bf16.msra.mxu0 %v829_v16 }
  0x11   :  { %409 = vmatprep.subr.bf16.mxu0 %v830_v17 }
  0x14   :  { %410 = vmatpush1.bf16.msra.mxu0 %v832_v18 }
  0x15   :  { %411 = vmatprep.subr.bf16.mxu0 %v833_v19 }
  0x18   :  { %412 = vmatpush1.bf16.msra.mxu0 %v835_v20 }
  0x19   :  { %413 = vmatprep.subr.bf16.mxu0 %v836_v21 }
  0x1c   :  { %414 = vmatpush1.bf16.msra.mxu0 %v838_v22 }
  0x1d   :  { %415 = vmatprep.subr.bf16.mxu0 %v839_v23 }
  0x20   :  { %416 = vmatpush1.bf16.msra.mxu0 %v841_v24 }
  0x21   :  { %19 = vsyncpa [#allocation7], 0  ;;  %417 = vmatprep.subr.bf16.mxu0 %v842_v25  ;;  %v845_v27 = vld [vmem:[%s1199_s6 + $0x84] ss:$8 sps:$4 sm:$0xff]   ;;  %v847_v28 = vld [vmem:[%s1199_s6 + $0x80] ss:$8 sps:$4 sm:$0xff]   ;;  %v179_v54 = vlaneseq }
  0x22   :  { %v848_v29 = vld [vmem:[%s1199_s6 + $0x94] ss:$8 sps:$4 sm:$0xff]   ;;  %v850_v30 = vld [vmem:[%s1199_s6 + $0x90] ss:$8 sps:$4 sm:$0xff]   ;;  %v851_v31 = vld [vmem:[%s1199_s6 + $0xa4] ss:$8 sps:$4 sm:$0xff]  }
  0x23   :  { %v853_v32 = vld [vmem:[%s1199_s6 + $0xa0] ss:$8 sps:$4 sm:$0xff]   ;;  %v854_v33 = vld [vmem:[%s1199_s6 + $0xb4] ss:$8 sps:$4 sm:$0xff]   ;;  %v856_v34 = vld [vmem:[%s1199_s6 + $0xb0] ss:$8 sps:$4 sm:$0xff]  }
  0x24   :  { %418 = vmatpush1.bf16.msra.mxu0 %v844_v26  ;;  %v857_v35 = vld [vmem:[%s1199_s6 + $0xc4] ss:$8 sps:$4 sm:$0xff]   ;;  %v859_v36 = vld [vmem:[%s1199_s6 + $0xc0] ss:$8 sps:$4 sm:$0xff]   ;;  %v860_v37 = vld [vmem:[%s1199_s6 + $0xd4] ss:$8 sps:$4 sm:$0xff]  }
  0x25   :  { %419 = vmatprep.subr.bf16.mxu0 %v845_v27  ;;  %v862_v38 = vld [vmem:[%s1199_s6 + $0xd0] ss:$8 sps:$4 sm:$0xff]   ;;  %v863_v39 = vld [vmem:[%s1199_s6 + $0xe4] ss:$8 sps:$4 sm:$0xff]   ;;  %v865_v40 = vld [vmem:[%s1199_s6 + $0xe0] ss:$8 sps:$4 sm:$0xff]  }
  0x26   :  { %v866_v41 = vld [vmem:[%s1199_s6 + $0xf4] ss:$8 sps:$4 sm:$0xff]   ;;  %v868_v42 = vld [vmem:[%s1199_s6 + $0xf0] ss:$8 sps:$4 sm:$0xff]   ;;  %v869_v43 = vld [vmem:[%s1201_s8 + $0x40] sm:$0xff]   ;;  %v180_v55 = vshrl.u32 %v179_v54, 7 }
  0x27   :  { %v870_v44 = vld [vmem:[%s1201_s8] sm:$0xff]   ;;  %v871_v45 = vld [vmem:[%s1201_s8 + $0x48] sm:$0xff]   ;;  %789 = vmatprep.subr.bf16.mxu1 %v869_v43  ;;  %v873_v47 = vld [vmem:[%s1201_s8 + $0x50] sm:$0xff]   ;;  %vm49_vm1 = vcmask 0   ;;  %vm661_vm2 = vcmask 7168  }
  0x28   :  { %420 = vmatpush1.bf16.msra.mxu0 %v847_v28  ;;  %790 = vmatpush3.bf16.msra.mxu1 %v870_v44  ;;  %v872_v46 = vld [vmem:[%s1201_s8 + $0x8] sm:$0xff]   ;;  %v874_v48 = vld [vmem:[%s1201_s8 + $0x10] sm:$0xff]   ;;  %v875_v49 = vld [vmem:[%s1201_s8 + $0x58] sm:$0xff]   ;;  %v1139_v60 = vsub.s32 0, %v180_v55  ;;  %v185_v62 = vsub.s32 1, %v180_v55  ;;  %v916_v55 = vmov -inf  }
  0x29   :  { %421 = vmatprep.subr.bf16.mxu0 %v848_v29  ;;  %791 = vmatprep.subr.bf16.mxu1 %v871_v45  ;;  %v876_v50 = vld [vmem:[%s1201_s8 + $0x18] sm:$0xff]   ;;  %v877_v51 = vld [vmem:[%s1201_s8 + $0x60] sm:$0xff]   ;;  %v879_v53 = vld [vmem:[%s1201_s8 + $0x68] sm:$0xff]   ;;  %51 = vst.msk [vmem:[#allocation3] sm:$0x1] %vm49_vm1, %v916_v55 }
  0x2a   :  { %v878_v52 = vld [vmem:[%s1201_s8 + $0x20] sm:$0xff]   ;;  %v880_v19 = vld [vmem:[%s1201_s8 + $0x28] sm:$0xff]   ;;  %v881_v20 = vld [vmem:[%s1201_s8 + $0x70] sm:$0xff]  }
  0x2b   :  { %v177_v61 = vld [vmem:[%s1198_s5] sm:$0x3]  ;;  %v882_v21 = vld [vmem:[%s1201_s8 + $0x30] sm:$0xff]   ;;  %v883_v22 = vld [vmem:[%s1201_s8 + $0x78] sm:$0xff]  }
  0x2c   :  { %422 = vmatpush1.bf16.msra.mxu0 %v850_v30  ;;  %792 = vmatpush3.bf16.msra.mxu1 %v872_v46  ;;  %v182_v63 = vrot.slane %v177_v61, %v1139_v60  ;;  %v186_v1 = vrot.slane %v177_v61, %v185_v62  ;;  %v884_v23 = vld [vmem:[%s1201_s8 + $0x38] sm:$0xff]   ;;  %v231_v24 = vld [vmem:[%s1200_s7] sm:$0x3] }
  0x2d   :  { %423 = vmatprep.subr.bf16.mxu0 %v851_v31  ;;  %793 = vmatprep.subr.bf16.mxu1 %v873_v47  ;;  %v236_v25 = vrot.slane %v231_v24, %v1139_v60  ;;  %v240_v26 = vrot.slane %v231_v24, %v185_v62  ;;  %v770_v45 = vld [vmem:[%s1202_s9] ss:$0 sm:$0xff]  ;;  %s918_s9 = smov [#allocation6]  }
  0x30   :  { %424 = vmatpush1.bf16.msra.mxu0 %v853_v32  ;;  %794 = vmatpush3.bf16.msra.mxu1 %v874_v48 }
  0x31   :  { %425 = vmatprep.subr.bf16.mxu0 %v854_v33  ;;  %795 = vmatprep.subr.bf16.mxu1 %v875_v49 }
  0x34   :  { %426 = vmatpush1.bf16.msra.mxu0 %v856_v34  ;;  %796 = vmatpush3.bf16.msra.mxu1 %v876_v50 }
  0x35   :  { %427 = vmatprep.subr.bf16.mxu0 %v857_v35  ;;  %797 = vmatprep.subr.bf16.mxu1 %v877_v51  ;;  %v787_v51 = vld [vmem:[%s1203_s10] ss:$0 sm:$0xff]  ;;  %s724_s10 = sshll.u32 %s918_s9, 4  ;;  %s725_s10 = int_to_ptr.vmem [resolvable:$true] %s724_s10 }
  0x36   :  { %s891_s4 = scalar_lea.vmem %s725_s10, 16  ;;  %s895_s19 = scalar_lea.vmem %s725_s10, 32 }
  0x37   :  { %p892_p0 = scmp.ne.s32.totalorder %s725_s10, %s891_s4  ;;  %p896_p1 = scmp.lt.s32.totalorder %s725_s10, %s725_s10 }
  0x38   :  { %428 = vmatpush1.bf16.msra.mxu0 %v859_v36  ;;  %798 = vmatpush3.bf16.msra.mxu1 %v878_v52  ;;  %p897_p2 = scmp.lt.s32.totalorder %s895_s19, %s891_s4 }
  0x39   :  { %429 = vmatprep.subr.bf16.mxu0 %v860_v37  ;;  %799 = vmatprep.subr.bf16.mxu1 %v879_v53 }
  0x3a   :  { %p898_p3 = por %p897_p2, %p896_p1 }
  0x3c   :  { %430 = vmatpush1.bf16.msra.mxu0 %v862_v38  ;;  %800 = vmatpush3.bf16.msra.mxu1 %v880_v19  ;;  %p899_p4 = pnand %p898_p3, %p892_p0 }
  0x3d   :  { %431 = vmatprep.subr.bf16.mxu0 %v863_v39  ;;  %801 = vmatprep.subr.bf16.mxu1 %v881_v20 }
  0x40   :  { %432 = vmatpush1.bf16.msra.mxu0 %v865_v40  ;;  %802 = vmatpush3.bf16.msra.mxu1 %v882_v21 }
  0x41   :  { %433 = vmatprep.subr.bf16.mxu0 %v866_v41  ;;  %803 = vmatprep.subr.bf16.mxu1 %v883_v22 }
  0x44   :  { %434 = vmatpush1.bf16.msra.mxu0 %v868_v42  ;;  %804 = vmatpush3.bf16.msra.mxu1 %v884_v23 }
  0xdb   :  { %v108_v56 = vpop.f32.mrb[0].mxu1 }
  0xdc   :  { %v110_v57 = vpop.f32.mrb[1].mxu1 }
  0xdd   :  { %v112_v58 = vpop.f32.mrb[2].mxu1 }
  0xde   :  { %v113_v59 = vpop.f32.mrb[3].mxu1 }
  0xe3   :  { %v164_v0 = vpop.f32.mrb[4].mxu1 }
  0xe4   :  { %v173_v2 = vadd.f32 %v164_v0, %v108_v56  ;;  %v166_v3 = vpop.f32.mrb[5].mxu1 }
  0xe5   :  { %v174_v4 = vadd.f32 %v166_v3, %v110_v57  ;;  %v168_v5 = vpop.f32.mrb[6].mxu1 }
  0xe6   :  { %v189_v6 = vadd.f32 %v182_v63, %v173_v2  ;;  %v175_v7 = vadd.f32 %v168_v5, %v108_v56  ;;  %v170_v8 = vpop.f32.mrb[7].mxu1  ;;  %v917_v56 = vmov 0.0  }
  0xe7   :  { %v176_v9 = vadd.f32 %v170_v8, %v110_v57  ;;  %v190_v10 = vadd.f32 %v186_v1, %v174_v4  ;;  %52 = vst.msk [vmem:[#allocation4] sm:$0x1] %vm49_vm1, %v917_v56  ;;  %50 = vst.msk [vmem:[#allocation2] sm:$0x1] %vm49_vm1, %v917_v56  ;;  %v788_v57 = vld [vmem:[#allocation5] ss:$0 sm:$0xff] }
  0xe8   :  { %v191_v11 = vadd.f32 %v182_v63, %v175_v7  ;;  %v193_v13 = vmax.f32 %v189_v6, 0.0 }
  0xe9   :  { %v192_v12 = vadd.f32 %v186_v1, %v176_v9  ;;  %v194_v15 = vmax.f32 %v190_v10, 0.0  ;;  %v672_v9 = vld [vmem:[#allocation3] sm:$0x1] }
  0xea   :  { %v195_v14 = vmax.f32 %v191_v11, 0.0 }
  0xeb   :  { %v196_v16 = vmax.f32 %v192_v12, 0.0 }
  0xec   :  { %v197_v17 = vpack.c.bf16 %v195_v14, %v193_v13 }
  0xed   :  { %v198_v18 = vpack.c.bf16 %v196_v16, %v194_v15 }
  0xee   :  { %v660_v14 = vld [vmem:[#allocation2] sm:$0x1] }
  0xef   :  { %435 = vmatprep.mubr.bf16.mxu0 %v198_v18 }
  0xf0   :  { %436 = vmatmul.mubr.bf16.vlgmr.msra.gmra.mrb[0].mxu0 %v197_v17 }
 0x1c3   :  { %v437_v27 = vpop.f32.mrb[0].mxu0 }
 0x1c4   :  { %v438_v28 = vadd.f32 %v437_v27, %v236_v25  ;;  %v439_v29 = vpop.f32.mrb[1].mxu0 }
 0x1c5   :  { %v440_v30 = vadd.f32 %v439_v29, %v240_v26  ;;  %v441_v31 = vpop.f32.mrb[2].mxu0 }
 0x1c6   :  { %v442_v32 = vadd.f32 %v441_v31, %v236_v25  ;;  %v443_v33 = vpop.f32.mrb[3].mxu0  ;;  %v446_v35 = vmax.f32 %v438_v28, 0.0  ;;  %v681_v28 = vld [vmem:[#allocation4] sm:$0x1] }
 0x1c7   :  { %v444_v34 = vadd.f32 %v443_v33, %v240_v26  ;;  %v447_v37 = vmax.f32 %v440_v30, 0.0 }
 0x1c8   :  { %v448_v36 = vmax.f32 %v442_v32, 0.0 }
 0x1c9   :  { %v449_v38 = vmax.f32 %v444_v34, 0.0 }
 0x1ca   :  { %v450_v39 = vpack.c.bf16 %v448_v36, %v446_v35 }
 0x1cb   :  { %v451_v40 = vpack.c.bf16 %v449_v38, %v447_v37 }
 0x1cd   :  { %619 = vmatprep.mubr.bf16.mxu1 %v451_v40 }
 0x1ce   :  { %620 = vmatmul.mubr.bf16.vlgmr.msra.gmra.mrb[8].mxu1 %v450_v39 }
 0x2a1   :  { %v805_v41 = vpop.f32.mrb[8].mxu1 }
 0x2a2   :  { %v806_v42 = vpop.f32.mrb[9].mxu1 }
 0x2a3   :  { %v807_v43 = vadd.f32 %v806_v42, %v805_v41  ;;  %v808_v44 = vpop.f32.mrb[10].mxu1 }
 0x2a4   :  { %v809_v46 = vpop.f32.mrb[11].mxu1 }
 0x2a5   :  { %v810_v47 = vadd.f32 %v809_v46, %v808_v44  ;;  %v622_v48 = vadd.f32 %v807_v43, %v770_v45 }
 0x2a7   :  { %v625_v49 = vadd.f32 %v810_v47, %v770_v45  ;;  %v628_v52 = vmax.f32 %v622_v48, 0.0 }
 0x2a9   :  { %v629_v50 = vmax.f32 %v625_v49, 0.0  ;;  %v637_v54 = vmul.f32 %v787_v51, %v628_v52 }
 0x2ab   :  { %v638_v53 = vmul.f32 %v787_v51, %v629_v50 }
 0x2ad   :  { %641 = vadd.xlane.f32.xlu0 %v638_v53 }
 0x2b1   :  { %639 = vadd.xlane.f32.xlu0 %v637_v54 }
 0x33a   :  { %v642_v58 = vpop.xlane.xlu0 %641 }
 0x33b   :  { %v651_v59 = vadd.f32 %v788_v57, %v642_v58 }
 0x33d   :  { %v673_v61 = vsel %vm661_vm2, %v651_v59, -inf }
 0x33e   :  { %v674_v62 = vrot.slane %v673_v61, 4  ;;  %v640_v63 = vpop.xlane.xlu0 %639 }
 0x33f   :  { %v650_v0 = vadd.f32 %v788_v57, %v640_v63 }
 0x340   :  { %v675_v1 = vmax.f32 %v673_v61, %v674_v62 }
 0x341   :  { %v662_v2 = vsel %vm661_vm2, %v650_v0, 0.0 }
 0x342   :  { %v676_v3 = vrot.slane %v675_v1, 2  ;;  %v663_v4 = vrot.slane %v662_v2, 4 }
 0x344   :  { %v677_v5 = vmax.f32 %v675_v1, %v676_v3  ;;  %v664_v6 = vadd.f32 %v663_v4, %v662_v2 }
 0x346   :  { %v678_v7 = vrot.slane %v677_v5, 1  ;;  %v665_v8 = vrot.slane %v664_v6, 2 }
 0x348   :  { %v679_v10 = vmax.f32 %v677_v5, %v678_v7  ;;  %v666_v11 = vadd.f32 %v665_v8, %v664_v6 }
 0x34a   :  { %v680_v12 = vmax.f32 %v672_v9, %v679_v10  ;;  %v667_v13 = vrot.slane %v666_v11, 1 }
 0x34c   :  { %v690_v15 = vrot.slane %v680_v12, %v1139_v60  ;;  %704 = vst.msk [vmem:[#allocation3] sm:$0x1] %vm49_vm1, %v680_v12  ;;  %v668_v16 = vadd.f32 %v667_v13, %v666_v11  ;;  %v682_v20 = vsub.f32 %v672_v9, %v680_v12 }
 0x34e   :  { %v692_v17 = vsub.f32 %v651_v59, %v690_v15  ;;  %v669_v18 = vadd.f32 %v668_v16, %v660_v14  ;;  %v683_v21 = vmul.f32 1.442695, %v682_v20 }
 0x350   :  { %v693_v19 = vmul.f32 1.442695, %v692_v17  ;;  %671 = vst.msk [vmem:[#allocation2] sm:$0x1] %vm49_vm1, %v669_v18 }
 0x352   :  { %885 = vpow2.f32 %v693_v19 }
 0x353   :  { %887 = vpow2.f32 %v683_v21  ;;  %v714_v38 = vld [vmem:[#allocation3] sm:$0x1] }
 0x357   :  { %v708_v36 = vld [vmem:[#allocation2] sm:$0x1] }
 0x358   :  { %v709_v39 = vmul.f32 0.125, %v708_v36 }
 0x35c   :  { %v886_v22 = vpop.eup %885 }
 0x35d   :  { %v695_v23 = vsel %vm661_vm2, %v886_v22, 0.0  ;;  %v888_v60 = vpop.eup %887 }
 0x35e   :  { %v696_v24 = vrot.slane %v695_v23, 4  ;;  %v685_v30 = vmul.f32 %v888_v60, %v681_v28 }
 0x360   :  { %v697_v25 = vadd.f32 %v696_v24, %v695_v23 }
 0x362   :  { %v698_v26 = vrot.slane %v697_v25, 2 }
 0x364   :  { %v699_v27 = vadd.f32 %v698_v26, %v697_v25 }
 0x366   :  { %v700_v29 = vrot.slane %v699_v27, 1 }
 0x368   :  { %v701_v31 = vadd.f32 %v700_v29, %v699_v27 }
 0x36a   :  { %v702_v32 = vadd.f32 %v701_v31, %v685_v30 }
 0x36c   :  { %703 = vst.msk [vmem:[#allocation4] sm:$0x1] %vm49_vm1, %v702_v32 }
 0x373   :  { %v710_v33 = vld [vmem:[#allocation4] sm:$0x1] }
 0x374   :  { %v711_v34 = vmul.f32 0.125, %v710_v33 }
 0x376   :  { %889 = vlog2.f32 %v711_v34 }
 0x380   :  { %v890_v35 = vpop.eup %889 }
 0x381   :  { %v713_v37 = vmul.f32 0.6931472, %v890_v35 }
 0x383   :  { %v715_v40 = vadd.f32 %v714_v38, %v713_v37 }
 0x385   :  { %v716_v41 = vsub.f32 %v709_v39, %v715_v40 }
 0x387   :  { %717 = vst.msk [vmem:[#allocation6] sm:$0x1] %vm49_vm1, %v716_v41 }
 0x388   :  { %902 = shalt.err (!%p899_p4)
}
 0x389   :  { %s903_s22 = scalar_lea.hbm %s1205_s12, 16 }
 0x38a   :  { %p904_p5 = scmp.ne.s32.totalorder %s1205_s12, %s903_s22  ;;  %p907_p6 = scmp.lt.u32.totalorder %s903_s22, %s1205_s12 }
 0x38c   :  { %p909_p7 = pnand %p907_p6, %p904_p5 }
 0x38e   :  { %912 = shalt.err (!%p909_p7)
}
 0x38f   :  { %727 = dma.vmem_to_hbm [thread:$0]  %s725_s10, 16, %s1205_s12, [#allocation7]  }
 0x390   :  { %913 = dma.done.wait [#allocation7], 16  }
 0x391   :  { %914 = vsyncadd [#allocation7], 4294967280 }
 0x392   :  { %731 = vsyncpa [#allocation7], 1 }

</bundles_post_ra>
